<compile_context>
chip_gen: v6e
topology: v6e:2x2x1
jax: 0.10.0
libtpu: 0.0.40
codegen_flags: <defaults>
</compile_context>

<pallas_src>
import functools

import jax
import jax.numpy as jnp
from jax.experimental import pallas as pl
from jax.experimental.pallas import tpu as pltpu


# ----------------------------------------------------------------------------
# Fused encoder kernel
# ----------------------------------------------------------------------------
def _layernorm(x, g, b):
    mu = jnp.mean(x, axis=-1, keepdims=True)
    var = jnp.mean((x - mu) ** 2, axis=-1, keepdims=True)
    return (x - mu) * jax.lax.rsqrt(var + 1e-12) * g + b


def _encoder_kernel(x_ref, mask_ref, eg_ref, eb_ref,
                    wqkv_ref, bqkv_ref, wo_ref, bo_ref, g1_ref, bln1_ref,
                    w1_ref, b1_ref, w2_ref, b2_ref, g2_ref, bln2_ref,
                    o_ref, h_ref, *, S, H, Hn):
    """One grid step = one full encoder layer for one batch row."""
    l = pl.program_id(1)
    Dh = H // Hn
    scale = 1.0 / (Dh ** 0.5)

    # Layer 0: embedding LayerNorm (no residual) seeds the hidden-state scratch.
    @pl.when(l == 0)
    def _():
        h_ref[...] = _layernorm(x_ref[...], eg_ref[...], eb_ref[...])

    x = h_ref[...]                                   # [S, H], VMEM-resident
    mask = mask_ref[...]                             # [1, S] additive mask

    # Fused QKV projection: one [S,H] x [H,3H] matmul instead of three.
    qkv = jnp.dot(x, wqkv_ref[...], preferred_element_type=jnp.float32)
    qkv = qkv + bqkv_ref[...]
    q, k, v = qkv[:, 0:H], qkv[:, H:2 * H], qkv[:, 2 * H:3 * H]

    # Per-head attention; heads live on the lane dim -> no 4-D reshape or
    # transpose is ever materialized, and K is consumed untransposed.
    heads = []
    for hh in range(Hn):
        c0 = hh * Dh
        qh, kh, vh = q[:, c0:c0 + Dh], k[:, c0:c0 + Dh], v[:, c0:c0 + Dh]
        scores = jax.lax.dot_general(
            qh, kh, (((1,), (1,)), ((), ())),        # contract on Dh of both
            preferred_element_type=jnp.float32) * scale
        scores = scores + mask                       # [S,S] + [1,S]
        m = jnp.max(scores, axis=-1, keepdims=True)
        p = jnp.exp(scores - m)
        p = p / jnp.sum(p, axis=-1, keepdims=True)
        heads.append(jnp.dot(p, vh, preferred_element_type=jnp.float32))
    ctx = jnp.concatenate(heads, axis=1)             # [S, H]

    attn = jnp.dot(ctx, wo_ref[...], preferred_element_type=jnp.float32)
    attn = attn + bo_ref[...]
    x = _layernorm(attn + x, g1_ref[...], bln1_ref[...])

    # FFN
    hmid = jnp.dot(x, w1_ref[...], preferred_element_type=jnp.float32)
    hmid = hmid + b1_ref[...]
    # TODO(synk): HuggingFace BERT uses exact erf GELU; tanh approximation here.
    hmid = jax.nn.gelu(hmid, approximate=True)
    ff = jnp.dot(hmid, w2_ref[...], preferred_element_type=jnp.float32)
    ff = ff + b2_ref[...]
    x = _layernorm(ff + x, g2_ref[...], bln2_ref[...])

    h_ref[...] = x
    o_ref[...] = x


def encoder_forward(params, x_emb, add_mask, *, B, S):
    """x_emb: [B*S, H] f32; add_mask: [B, 1, S] additive f32 mask."""
    H = x_emb.shape[1]
    Hn = params["num_heads"]
    L = params["wqkv"].shape[0]
    F = params["w1"].shape[2]

    const = lambda shape: pl.BlockSpec(shape, lambda b, l: (0, 0))
    perb = lambda shape: pl.BlockSpec(shape, lambda b, l: (b, 0))
    perb3 = lambda shape: pl.BlockSpec((None,) + shape, lambda b, l: (b, 0, 0))
    perl = lambda shape: pl.BlockSpec((None,) + shape, lambda b, l: (l, 0, 0))

    return pl.pallas_call(
        functools.partial(_encoder_kernel, S=S, H=H, Hn=Hn),
        grid=(B, L),
        in_specs=[
            perb((S, H)),                              # x_emb (per-batch rows)
            perb3((1, S)),                             # additive mask
            const((1, H)), const((1, H)),              # embedding LN gamma/beta
            perl((H, 3 * H)), perl((1, 3 * H)),        # wqkv, bqkv
            perl((H, H)), perl((1, H)),                # wo, bo
            perl((1, H)), perl((1, H)),                # ln1 gamma/beta
            perl((H, F)), perl((1, F)),                # w1, b1
            perl((F, H)), perl((1, H)),                # w2, b2
            perl((1, H)), perl((1, H)),                # ln2 gamma/beta
        ],
        out_specs=perb((S, H)),
        out_shape=jax.ShapeDtypeStruct((B * S, H), jnp.float32),
        scratch_shapes=[pltpu.VMEM((S, H), jnp.float32)],   # hidden state
        compiler_params=pltpu.CompilerParams(
            dimension_semantics=("parallel", "arbitrary")),
    )(x_emb, add_mask, params["emb_ln_g"], params["emb_ln_b"],
      params["wqkv"], params["bqkv"], params["wo"], params["bo"],
      params["ln1_g"], params["ln1_b"], params["w1"], params["b1"],
      params["w2"], params["b2"], params["ln2_g"], params["ln2_b"])


# ----------------------------------------------------------------------------
# Fused classification head: CLS + pooler(tanh) + classifier + softmax + CE
# ----------------------------------------------------------------------------
def _head_kernel(x_ref, wp_ref, bp_ref, wc_ref, bc_ref, lab_ref,
                 logits_ref, probs_ref, loss_ref, *, B, S, num_labels):
    x = x_ref[...]                                            # [B*S, H]
    cls = jnp.concatenate([x[b * S:b * S + 1, :] for b in range(B)], axis=0)

    pooled = jnp.dot(cls, wp_ref[...], preferred_element_type=jnp.float32)
    pooled = jnp.tanh(pooled + bp_ref[...])
    logits = jnp.dot(pooled, wc_ref[...], preferred_element_type=jnp.float32)
    logits = logits + bc_ref[...]
    logits_ref[...] = logits

    m = jnp.max(logits, axis=-1, keepdims=True)
    e = jnp.exp(logits - m)
    s = jnp.sum(e, axis=-1, keepdims=True)
    probs_ref[...] = e / s

    logp = (logits - m) - jnp.log(s)
    onehot = (jax.lax.broadcasted_iota(jnp.int32, (B, num_labels), 1)
              == lab_ref[...]).astype(jnp.float32)
    nll = -jnp.sum(onehot * logp, axis=-1, keepdims=True)     # [B, 1]
    loss_ref[...] = jnp.mean(nll) * jnp.ones((1, 1), jnp.float32)


def head_forward(params, hidden, labels, *, B, S):
    NL = params["num_labels"]
    lab2d = (jnp.zeros((B, 1), jnp.int32) if labels is None
             else labels.reshape(B, 1).astype(jnp.int32))
    logits, probs, loss = pl.pallas_call(
        functools.partial(_head_kernel, B=B, S=S, num_labels=NL),
        out_shape=(
            jax.ShapeDtypeStruct((B, NL), jnp.float32),
            jax.ShapeDtypeStruct((B, NL), jnp.float32),
            jax.ShapeDtypeStruct((1, 1), jnp.float32),
        ),
    )(hidden, params["wp"], params["bp"], params["wc"], params["bc"], lab2d)
    loss_out = loss[0, 0] if labels is not None else None
    return loss_out, logits, probs


# ----------------------------------------------------------------------------
# Model (deterministic synthetic parameters; no checkpoint load)
# ----------------------------------------------------------------------------
def init_params(key, vocab=100, H=32, n_layers=2, heads=2, ffn=64,
                max_pos=16, type_vocab=2, num_labels=2):
    keys = iter(jax.random.split(key, 32))

    def w(shape):
        return jax.random.normal(next(keys), shape, jnp.float32) * 0.02

    L = n_layers
    return dict(
        word_emb=w((vocab, H)),
        pos_emb=w((max_pos, H)),
        type_emb=w((type_vocab, H)),
        emb_ln_g=jnp.ones((1, H), jnp.float32),
        emb_ln_b=jnp.zeros((1, H), jnp.float32),
        # per-layer weights stacked along the layer grid axis
        wqkv=w((L, H, 3 * H)), bqkv=jnp.zeros((L, 1, 3 * H), jnp.float32),
        wo=w((L, H, H)), bo=jnp.zeros((L, 1, H), jnp.float32),
        ln1_g=jnp.ones((L, 1, H), jnp.float32),
        ln1_b=jnp.zeros((L, 1, H), jnp.float32),
        w1=w((L, H, ffn)), b1=jnp.zeros((L, 1, ffn), jnp.float32),
        w2=w((L, ffn, H)), b2=jnp.zeros((L, 1, H), jnp.float32),
        ln2_g=jnp.ones((L, 1, H), jnp.float32),
        ln2_b=jnp.zeros((L, 1, H), jnp.float32),
        wp=w((H, H)), bp=jnp.zeros((1, H), jnp.float32),
        wc=w((H, num_labels)), bc=jnp.zeros((1, num_labels), jnp.float32),
        num_heads=heads, num_labels=num_labels,
    )


def transformer_classifier_forward(params, batch_sequences, batch_sequence_masks,
                                   batch_sequence_segments, labels=None):
    """Returns (loss, logits, probabilities), matching the PyTorch module."""
    B, S = batch_sequences.shape
    H = params["word_emb"].shape[1]

    # --- embeddings (gather glue; embedding LayerNorm is fused into encoder) ---
    x = (jnp.take(params["word_emb"], batch_sequences, axis=0)
         + params["pos_emb"][None, :S, :]
         + jnp.take(params["type_emb"], batch_sequence_segments, axis=0))
    x = x.reshape(B * S, H).astype(jnp.float32)

    # additive attention mask: 0 where attended, -1e9 where masked, [B, 1, S]
    add_mask = ((1.0 - batch_sequence_masks.astype(jnp.float32)) * -1e9)[:, None, :]

    hidden = encoder_forward(params, x, add_mask, B=B, S=S)
    return head_forward(params, hidden, labels, B=B, S=S)


# ----------------------------------------------------------------------------
if __name__ == "__main__":
    key = jax.random.PRNGKey(0)
    kp, kid, kseg, klab = jax.random.split(key, 4)

    B, S, VOCAB = 2, 8, 100
    params = init_params(kp, vocab=VOCAB, H=32, n_layers=2, heads=2, ffn=64,
                         max_pos=16, type_vocab=2, num_labels=2)

    batch_sequences = jax.random.randint(kid, (B, S), 0, VOCAB, dtype=jnp.int32)
    batch_sequence_masks = jnp.ones((B, S), jnp.int32)
    batch_sequence_segments = jax.random.randint(kseg, (B, S), 0, 2, dtype=jnp.int32)
    labels = jax.random.randint(klab, (B,), 0, 2, dtype=jnp.int32)

    loss, logits, probs = transformer_classifier_forward(
        params, batch_sequences, batch_sequence_masks,
        batch_sequence_segments, labels)
    jax.block_until_ready((loss, logits, probs))

    assert logits.shape == (B, 2) and probs.shape == (B, 2) and loss.shape == ()
    print("KERNEL_OK")
</pallas_src>

<mosaic_0001>
module attributes {stable_mosaic.version = 11 : i64} {
  func.func @_encoder_kernel(%arg0: i32, %arg1: i32, %arg2: memref<8x32xf32, #tpu.memory_space<vmem>>, %arg3: memref<1x1x8xf32, #tpu.memory_space<vmem>>, %arg4: memref<1x32xf32, #tpu.memory_space<vmem>>, %arg5: memref<1x32xf32, #tpu.memory_space<vmem>>, %arg6: memref<1x32x96xf32, #tpu.memory_space<vmem>>, %arg7: memref<1x1x96xf32, #tpu.memory_space<vmem>>, %arg8: memref<1x32x32xf32, #tpu.memory_space<vmem>>, %arg9: memref<1x1x32xf32, #tpu.memory_space<vmem>>, %arg10: memref<1x1x32xf32, #tpu.memory_space<vmem>>, %arg11: memref<1x1x32xf32, #tpu.memory_space<vmem>>, %arg12: memref<1x32x64xf32, #tpu.memory_space<vmem>>, %arg13: memref<1x1x64xf32, #tpu.memory_space<vmem>>, %arg14: memref<1x64x32xf32, #tpu.memory_space<vmem>>, %arg15: memref<1x1x32xf32, #tpu.memory_space<vmem>>, %arg16: memref<1x1x32xf32, #tpu.memory_space<vmem>>, %arg17: memref<1x1x32xf32, #tpu.memory_space<vmem>>, %arg18: memref<8x32xf32, #tpu.memory_space<vmem>>, %arg19: memref<8x32xf32, #tpu.memory_space<vmem>>) attributes {dimension_semantics = [#tpu.dimension_semantics<parallel>, #tpu.dimension_semantics<arbitrary>], iteration_bounds = array<i64: 2, 2>, scalar_prefetch = 0 : i64, scratch_operands = 1 : i64, tpu.core_type = #tpu.core_type<tc>, window_params = [{transform_indices = @transform_0, window_bounds = array<i64: 8, 32>}, {transform_indices = @transform_1, window_bounds = array<i64: 1, 1, 8>}, {pipeline_mode = #tpu.pipeline_mode<synchronous>, transform_indices = @transform_2, window_bounds = array<i64: 1, 32>}, {pipeline_mode = #tpu.pipeline_mode<synchronous>, transform_indices = @transform_3, window_bounds = array<i64: 1, 32>}, {transform_indices = @transform_4, window_bounds = array<i64: 1, 32, 96>}, {transform_indices = @transform_5, window_bounds = array<i64: 1, 1, 96>}, {transform_indices = @transform_6, window_bounds = array<i64: 1, 32, 32>}, {transform_indices = @transform_7, window_bounds = array<i64: 1, 1, 32>}, {transform_indices = @transform_8, window_bounds = array<i64: 1, 1, 32>}, {transform_indices = @transform_9, window_bounds = array<i64: 1, 1, 32>}, {transform_indices = @transform_10, window_bounds = array<i64: 1, 32, 64>}, {transform_indices = @transform_11, window_bounds = array<i64: 1, 1, 64>}, {transform_indices = @transform_12, window_bounds = array<i64: 1, 64, 32>}, {transform_indices = @transform_13, window_bounds = array<i64: 1, 1, 32>}, {transform_indices = @transform_14, window_bounds = array<i64: 1, 1, 32>}, {transform_indices = @transform_15, window_bounds = array<i64: 1, 1, 32>}, {transform_indices = @transform_16, window_bounds = array<i64: 8, 32>}]} {
    %c0_i32 = arith.constant 0 : i32
    %0 = arith.cmpi eq, %arg1, %c0_i32 : i32
    %1 = arith.extui %0 : i1 to i32
    %c0_i32_0 = arith.constant 0 : i32
    %2 = arith.cmpi ne, %1, %c0_i32_0 : i32
    scf.if %2 {
      %c0_72 = arith.constant 0 : index
      %c0_73 = arith.constant 0 : index
      %143 = vector.load %arg2[%c0_72, %c0_73] : memref<8x32xf32, #tpu.memory_space<vmem>>, vector<8x32xf32>
      %c0_74 = arith.constant 0 : index
      %c0_75 = arith.constant 0 : index
      %144 = vector.load %arg4[%c0_74, %c0_75] : memref<1x32xf32, #tpu.memory_space<vmem>>, vector<1x32xf32>
      %c0_76 = arith.constant 0 : index
      %c0_77 = arith.constant 0 : index
      %145 = vector.load %arg5[%c0_76, %c0_77] : memref<1x32xf32, #tpu.memory_space<vmem>>, vector<1x32xf32>
      %cst_78 = arith.constant dense<0.000000e+00> : vector<8xf32>
      %146 = vector.multi_reduction <add>, %143, %cst_78 [1] : vector<8x32xf32> to vector<8xf32>
      %147 = vector.shape_cast %146 : vector<8xf32> to vector<8x1xf32>
      %cst_79 = arith.constant 3.200000e+01 : f32
      %148 = vector.broadcast %cst_79 : f32 to vector<8x1xf32>
      %149 = arith.divf %147, %148 : vector<8x1xf32>
      %150 = vector.broadcast %149 : vector<8x1xf32> to vector<8x32xf32>
      %151 = arith.subf %143, %150 : vector<8x32xf32>
      %152 = arith.mulf %151, %151 : vector<8x32xf32>
      %cst_80 = arith.constant dense<0.000000e+00> : vector<8xf32>
      %153 = vector.multi_reduction <add>, %152, %cst_80 [1] : vector<8x32xf32> to vector<8xf32>
      %154 = vector.shape_cast %153 : vector<8xf32> to vector<8x1xf32>
      %cst_81 = arith.constant 3.200000e+01 : f32
      %155 = vector.broadcast %cst_81 : f32 to vector<8x1xf32>
      %156 = arith.divf %154, %155 : vector<8x1xf32>
      %157 = vector.broadcast %149 : vector<8x1xf32> to vector<8x32xf32>
      %158 = arith.subf %143, %157 : vector<8x32xf32>
      %cst_82 = arith.constant 9.99999996E-13 : f32
      %159 = vector.broadcast %cst_82 : f32 to vector<8x1xf32>
      %160 = arith.addf %156, %159 : vector<8x1xf32>
      %161 = math.rsqrt %160 : vector<8x1xf32>
      %162 = vector.broadcast %161 : vector<8x1xf32> to vector<8x32xf32>
      %163 = arith.mulf %158, %162 : vector<8x32xf32>
      %164 = vector.broadcast %144 : vector<1x32xf32> to vector<8x32xf32>
      %165 = arith.mulf %163, %164 : vector<8x32xf32>
      %166 = vector.broadcast %145 : vector<1x32xf32> to vector<8x32xf32>
      %167 = arith.addf %165, %166 : vector<8x32xf32>
      %c0_83 = arith.constant 0 : index
      %c0_84 = arith.constant 0 : index
      %168 = vector.load %arg19[%c0_83, %c0_84] : memref<8x32xf32, #tpu.memory_space<vmem>>, vector<8x32xf32>
      tpu.vector_store %arg19[%c0_83, %c0_84], %167 {strides = array<i32>} : memref<8x32xf32, #tpu.memory_space<vmem>>, vector<8x32xf32>,
    } else {
    }
    %c0 = arith.constant 0 : index
    %c0_1 = arith.constant 0 : index
    %3 = vector.load %arg19[%c0, %c0_1] : memref<8x32xf32, #tpu.memory_space<vmem>>, vector<8x32xf32>
    %c0_2 = arith.constant 0 : index
    %c0_3 = arith.constant 0 : index
    %c0_4 = arith.constant 0 : index
    %4 = vector.load %arg3[%c0_2, %c0_3, %c0_4] : memref<1x1x8xf32, #tpu.memory_space<vmem>>, vector<1x1x8xf32>
    %5 = vector.shape_cast %4 : vector<1x1x8xf32> to vector<1x8xf32>
    %c0_5 = arith.constant 0 : index
    %c0_6 = arith.constant 0 : index
    %c0_7 = arith.constant 0 : index
    %6 = vector.load %arg6[%c0_5, %c0_6, %c0_7] : memref<1x32x96xf32, #tpu.memory_space<vmem>>, vector<1x32x96xf32>
    %7 = vector.shape_cast %6 : vector<1x32x96xf32> to vector<32x96xf32>
    %cst = arith.constant dense<0.000000e+00> : vector<8x96xf32>
    %8 = tpu.matmul %3, %7, %cst {dimension_numbers = #tpu.dot_dimension_numbers<[1], [0], [0], [1], [0, 0, 1, 1], [], []>} : vector<8x32xf32>, vector<32x96xf32>, vector<8x96xf32> -> vector<8x96xf32>
    %c0_8 = arith.constant 0 : index
    %c0_9 = arith.constant 0 : index
    %c0_10 = arith.constant 0 : index
    %9 = vector.load %arg7[%c0_8, %c0_9, %c0_10] : memref<1x1x96xf32, #tpu.memory_space<vmem>>, vector<1x1x96xf32>
    %10 = vector.shape_cast %9 : vector<1x1x96xf32> to vector<1x96xf32>
    %11 = vector.broadcast %10 : vector<1x96xf32> to vector<8x96xf32>
    %12 = arith.addf %8, %11 : vector<8x96xf32>
    %13 = vector.extract_strided_slice %12 {offsets = [0, 0], sizes = [8, 32], strides = [1, 1]} : vector<8x96xf32> to vector<8x32xf32>
    %14 = vector.extract_strided_slice %12 {offsets = [0, 32], sizes = [8, 32], strides = [1, 1]} : vector<8x96xf32> to vector<8x32xf32>
    %15 = vector.extract_strided_slice %12 {offsets = [0, 64], sizes = [8, 32], strides = [1, 1]} : vector<8x96xf32> to vector<8x32xf32>
    %16 = vector.extract_strided_slice %13 {offsets = [0, 0], sizes = [8, 16], strides = [1, 1]} : vector<8x32xf32> to vector<8x16xf32>
    %17 = vector.extract_strided_slice %14 {offsets = [0, 0], sizes = [8, 16], strides = [1, 1]} : vector<8x32xf32> to vector<8x16xf32>
    %18 = vector.extract_strided_slice %15 {offsets = [0, 0], sizes = [8, 16], strides = [1, 1]} : vector<8x32xf32> to vector<8x16xf32>
    %cst_11 = arith.constant dense<0.000000e+00> : vector<8x8xf32>
    %19 = tpu.matmul %16, %17, %cst_11 {dimension_numbers = #tpu.dot_dimension_numbers<[1], [1], [0], [0], [0, 0, 1, 0], [], []>} : vector<8x16xf32>, vector<8x16xf32>, vector<8x8xf32> -> vector<8x8xf32>
    %cst_12 = arith.constant 2.500000e-01 : f32
    %20 = vector.broadcast %cst_12 : f32 to vector<8x8xf32>
    %21 = arith.mulf %19, %20 : vector<8x8xf32>
    %22 = vector.broadcast %5 : vector<1x8xf32> to vector<8x8xf32>
    %23 = arith.addf %21, %22 : vector<8x8xf32>
    %cst_13 = arith.constant dense<0xFF800000> : vector<8xf32>
    %24 = vector.multi_reduction <maximumf>, %23, %cst_13 [1] : vector<8x8xf32> to vector<8xf32>
    %25 = vector.shape_cast %24 : vector<8xf32> to vector<8x1xf32>
    %26 = vector.broadcast %25 : vector<8x1xf32> to vector<8x8xf32>
    %27 = arith.subf %23, %26 : vector<8x8xf32>
    %28 = math.exp %27 : vector<8x8xf32>
    %cst_14 = arith.constant dense<0.000000e+00> : vector<8xf32>
    %29 = vector.multi_reduction <add>, %28, %cst_14 [1] : vector<8x8xf32> to vector<8xf32>
    %30 = vector.shape_cast %29 : vector<8xf32> to vector<8x1xf32>
    %31 = vector.broadcast %30 : vector<8x1xf32> to vector<8x8xf32>
    %32 = arith.divf %28, %31 : vector<8x8xf32>
    %cst_15 = arith.constant dense<0.000000e+00> : vector<8x16xf32>
    %33 = tpu.matmul %32, %18, %cst_15 {dimension_numbers = #tpu.dot_dimension_numbers<[1], [0], [0], [1], [0, 0, 1, 1], [], []>} : vector<8x8xf32>, vector<8x16xf32>, vector<8x16xf32> -> vector<8x16xf32>
    %34 = vector.extract_strided_slice %13 {offsets = [0, 16], sizes = [8, 16], strides = [1, 1]} : vector<8x32xf32> to vector<8x16xf32>
    %35 = vector.extract_strided_slice %14 {offsets = [0, 16], sizes = [8, 16], strides = [1, 1]} : vector<8x32xf32> to vector<8x16xf32>
    %36 = vector.extract_strided_slice %15 {offsets = [0, 16], sizes = [8, 16], strides = [1, 1]} : vector<8x32xf32> to vector<8x16xf32>
    %cst_16 = arith.constant dense<0.000000e+00> : vector<8x8xf32>
    %37 = tpu.matmul %34, %35, %cst_16 {dimension_numbers = #tpu.dot_dimension_numbers<[1], [1], [0], [0], [0, 0, 1, 0], [], []>} : vector<8x16xf32>, vector<8x16xf32>, vector<8x8xf32> -> vector<8x8xf32>
    %cst_17 = arith.constant 2.500000e-01 : f32
    %38 = vector.broadcast %cst_17 : f32 to vector<8x8xf32>
    %39 = arith.mulf %37, %38 : vector<8x8xf32>
    %40 = vector.broadcast %5 : vector<1x8xf32> to vector<8x8xf32>
    %41 = arith.addf %39, %40 : vector<8x8xf32>
    %cst_18 = arith.constant dense<0xFF800000> : vector<8xf32>
    %42 = vector.multi_reduction <maximumf>, %41, %cst_18 [1] : vector<8x8xf32> to vector<8xf32>
    %43 = vector.shape_cast %42 : vector<8xf32> to vector<8x1xf32>
    %44 = vector.broadcast %43 : vector<8x1xf32> to vector<8x8xf32>
    %45 = arith.subf %41, %44 : vector<8x8xf32>
    %46 = math.exp %45 : vector<8x8xf32>
    %cst_19 = arith.constant dense<0.000000e+00> : vector<8xf32>
    %47 = vector.multi_reduction <add>, %46, %cst_19 [1] : vector<8x8xf32> to vector<8xf32>
    %48 = vector.shape_cast %47 : vector<8xf32> to vector<8x1xf32>
    %49 = vector.broadcast %48 : vector<8x1xf32> to vector<8x8xf32>
    %50 = arith.divf %46, %49 : vector<8x8xf32>
    %cst_20 = arith.constant dense<0.000000e+00> : vector<8x16xf32>
    %51 = tpu.matmul %50, %36, %cst_20 {dimension_numbers = #tpu.dot_dimension_numbers<[1], [0], [0], [1], [0, 0, 1, 1], [], []>} : vector<8x8xf32>, vector<8x16xf32>, vector<8x16xf32> -> vector<8x16xf32>
    %52 = tpu.concatenate %33, %51 in 1 : vector<8x16xf32>, vector<8x16xf32> -> vector<8x32xf32>
    %c0_21 = arith.constant 0 : index
    %c0_22 = arith.constant 0 : index
    %c0_23 = arith.constant 0 : index
    %53 = vector.load %arg8[%c0_21, %c0_22, %c0_23] : memref<1x32x32xf32, #tpu.memory_space<vmem>>, vector<1x32x32xf32>
    %54 = vector.shape_cast %53 : vector<1x32x32xf32> to vector<32x32xf32>
    %cst_24 = arith.constant dense<0.000000e+00> : vector<8x32xf32>
    %55 = tpu.matmul %52, %54, %cst_24 {dimension_numbers = #tpu.dot_dimension_numbers<[1], [0], [0], [1], [0, 0, 1, 1], [], []>} : vector<8x32xf32>, vector<32x32xf32>, vector<8x32xf32> -> vector<8x32xf32>
    %c0_25 = arith.constant 0 : index
    %c0_26 = arith.constant 0 : index
    %c0_27 = arith.constant 0 : index
    %56 = vector.load %arg9[%c0_25, %c0_26, %c0_27] : memref<1x1x32xf32, #tpu.memory_space<vmem>>, vector<1x1x32xf32>
    %57 = vector.shape_cast %56 : vector<1x1x32xf32> to vector<1x32xf32>
    %58 = vector.broadcast %57 : vector<1x32xf32> to vector<8x32xf32>
    %59 = arith.addf %55, %58 : vector<8x32xf32>
    %60 = arith.addf %59, %3 : vector<8x32xf32>
    %c0_28 = arith.constant 0 : index
    %c0_29 = arith.constant 0 : index
    %c0_30 = arith.constant 0 : index
    %61 = vector.load %arg10[%c0_28, %c0_29, %c0_30] : memref<1x1x32xf32, #tpu.memory_space<vmem>>, vector<1x1x32xf32>
    %62 = vector.shape_cast %61 : vector<1x1x32xf32> to vector<1x32xf32>
    %c0_31 = arith.constant 0 : index
    %c0_32 = arith.constant 0 : index
    %c0_33 = arith.constant 0 : index
    %63 = vector.load %arg11[%c0_31, %c0_32, %c0_33] : memref<1x1x32xf32, #tpu.memory_space<vmem>>, vector<1x1x32xf32>
    %64 = vector.shape_cast %63 : vector<1x1x32xf32> to vector<1x32xf32>
    %cst_34 = arith.constant dense<0.000000e+00> : vector<8xf32>
    %65 = vector.multi_reduction <add>, %60, %cst_34 [1] : vector<8x32xf32> to vector<8xf32>
    %66 = vector.shape_cast %65 : vector<8xf32> to vector<8x1xf32>
    %cst_35 = arith.constant 3.200000e+01 : f32
    %67 = vector.broadcast %cst_35 : f32 to vector<8x1xf32>
    %68 = arith.divf %66, %67 : vector<8x1xf32>
    %69 = vector.broadcast %68 : vector<8x1xf32> to vector<8x32xf32>
    %70 = arith.subf %60, %69 : vector<8x32xf32>
    %71 = arith.mulf %70, %70 : vector<8x32xf32>
    %cst_36 = arith.constant dense<0.000000e+00> : vector<8xf32>
    %72 = vector.multi_reduction <add>, %71, %cst_36 [1] : vector<8x32xf32> to vector<8xf32>
    %73 = vector.shape_cast %72 : vector<8xf32> to vector<8x1xf32>
    %cst_37 = arith.constant 3.200000e+01 : f32
    %74 = vector.broadcast %cst_37 : f32 to vector<8x1xf32>
    %75 = arith.divf %73, %74 : vector<8x1xf32>
    %76 = vector.broadcast %68 : vector<8x1xf32> to vector<8x32xf32>
    %77 = arith.subf %60, %76 : vector<8x32xf32>
    %cst_38 = arith.constant 9.99999996E-13 : f32
    %78 = vector.broadcast %cst_38 : f32 to vector<8x1xf32>
    %79 = arith.addf %75, %78 : vector<8x1xf32>
    %80 = math.rsqrt %79 : vector<8x1xf32>
    %81 = vector.broadcast %80 : vector<8x1xf32> to vector<8x32xf32>
    %82 = arith.mulf %77, %81 : vector<8x32xf32>
    %83 = vector.broadcast %62 : vector<1x32xf32> to vector<8x32xf32>
    %84 = arith.mulf %82, %83 : vector<8x32xf32>
    %85 = vector.broadcast %64 : vector<1x32xf32> to vector<8x32xf32>
    %86 = arith.addf %84, %85 : vector<8x32xf32>
    %c0_39 = arith.constant 0 : index
    %c0_40 = arith.constant 0 : index
    %c0_41 = arith.constant 0 : index
    %87 = vector.load %arg12[%c0_39, %c0_40, %c0_41] : memref<1x32x64xf32, #tpu.memory_space<vmem>>, vector<1x32x64xf32>
    %88 = vector.shape_cast %87 : vector<1x32x64xf32> to vector<32x64xf32>
    %cst_42 = arith.constant dense<0.000000e+00> : vector<8x64xf32>
    %89 = tpu.matmul %86, %88, %cst_42 {dimension_numbers = #tpu.dot_dimension_numbers<[1], [0], [0], [1], [0, 0, 1, 1], [], []>} : vector<8x32xf32>, vector<32x64xf32>, vector<8x64xf32> -> vector<8x64xf32>
    %c0_43 = arith.constant 0 : index
    %c0_44 = arith.constant 0 : index
    %c0_45 = arith.constant 0 : index
    %90 = vector.load %arg13[%c0_43, %c0_44, %c0_45] : memref<1x1x64xf32, #tpu.memory_space<vmem>>, vector<1x1x64xf32>
    %91 = vector.shape_cast %90 : vector<1x1x64xf32> to vector<1x64xf32>
    %92 = vector.broadcast %91 : vector<1x64xf32> to vector<8x64xf32>
    %93 = arith.addf %89, %92 : vector<8x64xf32>
    %94 = arith.mulf %93, %93 : vector<8x64xf32>
    %95 = arith.mulf %93, %94 : vector<8x64xf32>
    %cst_46 = arith.constant 4.471500e-02 : f32
    %96 = vector.broadcast %cst_46 : f32 to vector<8x64xf32>
    %97 = arith.mulf %96, %95 : vector<8x64xf32>
    %98 = arith.addf %93, %97 : vector<8x64xf32>
    %cst_47 = arith.constant 0.797884583 : f32
    %99 = vector.broadcast %cst_47 : f32 to vector<8x64xf32>
    %100 = arith.mulf %99, %98 : vector<8x64xf32>
    %101 = math.tanh %100 : vector<8x64xf32>
    %cst_48 = arith.constant 1.000000e+00 : f32
    %102 = vector.broadcast %cst_48 : f32 to vector<8x64xf32>
    %103 = arith.addf %102, %101 : vector<8x64xf32>
    %cst_49 = arith.constant 5.000000e-01 : f32
    %104 = vector.broadcast %cst_49 : f32 to vector<8x64xf32>
    %105 = arith.mulf %104, %103 : vector<8x64xf32>
    %106 = arith.mulf %93, %105 : vector<8x64xf32>
    %c0_50 = arith.constant 0 : index
    %c0_51 = arith.constant 0 : index
    %c0_52 = arith.constant 0 : index
    %107 = vector.load %arg14[%c0_50, %c0_51, %c0_52] : memref<1x64x32xf32, #tpu.memory_space<vmem>>, vector<1x64x32xf32>
    %108 = vector.shape_cast %107 : vector<1x64x32xf32> to vector<64x32xf32>
    %cst_53 = arith.constant dense<0.000000e+00> : vector<8x32xf32>
    %109 = tpu.matmul %106, %108, %cst_53 {dimension_numbers = #tpu.dot_dimension_numbers<[1], [0], [0], [1], [0, 0, 1, 1], [], []>} : vector<8x64xf32>, vector<64x32xf32>, vector<8x32xf32> -> vector<8x32xf32>
    %c0_54 = arith.constant 0 : index
    %c0_55 = arith.constant 0 : index
    %c0_56 = arith.constant 0 : index
    %110 = vector.load %arg15[%c0_54, %c0_55, %c0_56] : memref<1x1x32xf32, #tpu.memory_space<vmem>>, vector<1x1x32xf32>
    %111 = vector.shape_cast %110 : vector<1x1x32xf32> to vector<1x32xf32>
    %112 = vector.broadcast %111 : vector<1x32xf32> to vector<8x32xf32>
    %113 = arith.addf %109, %112 : vector<8x32xf32>
    %114 = arith.addf %113, %86 : vector<8x32xf32>
    %c0_57 = arith.constant 0 : index
    %c0_58 = arith.constant 0 : index
    %c0_59 = arith.constant 0 : index
    %115 = vector.load %arg16[%c0_57, %c0_58, %c0_59] : memref<1x1x32xf32, #tpu.memory_space<vmem>>, vector<1x1x32xf32>
    %116 = vector.shape_cast %115 : vector<1x1x32xf32> to vector<1x32xf32>
    %c0_60 = arith.constant 0 : index
    %c0_61 = arith.constant 0 : index
    %c0_62 = arith.constant 0 : index
    %117 = vector.load %arg17[%c0_60, %c0_61, %c0_62] : memref<1x1x32xf32, #tpu.memory_space<vmem>>, vector<1x1x32xf32>
    %118 = vector.shape_cast %117 : vector<1x1x32xf32> to vector<1x32xf32>
    %cst_63 = arith.constant dense<0.000000e+00> : vector<8xf32>
    %119 = vector.multi_reduction <add>, %114, %cst_63 [1] : vector<8x32xf32> to vector<8xf32>
    %120 = vector.shape_cast %119 : vector<8xf32> to vector<8x1xf32>
    %cst_64 = arith.constant 3.200000e+01 : f32
    %121 = vector.broadcast %cst_64 : f32 to vector<8x1xf32>
    %122 = arith.divf %120, %121 : vector<8x1xf32>
    %123 = vector.broadcast %122 : vector<8x1xf32> to vector<8x32xf32>
    %124 = arith.subf %114, %123 : vector<8x32xf32>
    %125 = arith.mulf %124, %124 : vector<8x32xf32>
    %cst_65 = arith.constant dense<0.000000e+00> : vector<8xf32>
    %126 = vector.multi_reduction <add>, %125, %cst_65 [1] : vector<8x32xf32> to vector<8xf32>
    %127 = vector.shape_cast %126 : vector<8xf32> to vector<8x1xf32>
    %cst_66 = arith.constant 3.200000e+01 : f32
    %128 = vector.broadcast %cst_66 : f32 to vector<8x1xf32>
    %129 = arith.divf %127, %128 : vector<8x1xf32>
    %130 = vector.broadcast %122 : vector<8x1xf32> to vector<8x32xf32>
    %131 = arith.subf %114, %130 : vector<8x32xf32>
    %cst_67 = arith.constant 9.99999996E-13 : f32
    %132 = vector.broadcast %cst_67 : f32 to vector<8x1xf32>
    %133 = arith.addf %129, %132 : vector<8x1xf32>
    %134 = math.rsqrt %133 : vector<8x1xf32>
    %135 = vector.broadcast %134 : vector<8x1xf32> to vector<8x32xf32>
    %136 = arith.mulf %131, %135 : vector<8x32xf32>
    %137 = vector.broadcast %116 : vector<1x32xf32> to vector<8x32xf32>
    %138 = arith.mulf %136, %137 : vector<8x32xf32>
    %139 = vector.broadcast %118 : vector<1x32xf32> to vector<8x32xf32>
    %140 = arith.addf %138, %139 : vector<8x32xf32>
    %c0_68 = arith.constant 0 : index
    %c0_69 = arith.constant 0 : index
    %141 = vector.load %arg19[%c0_68, %c0_69] : memref<8x32xf32, #tpu.memory_space<vmem>>, vector<8x32xf32>
    tpu.vector_store %arg19[%c0_68, %c0_69], %140 {strides = array<i32>} : memref<8x32xf32, #tpu.memory_space<vmem>>, vector<8x32xf32>,
    %c0_70 = arith.constant 0 : index
    %c0_71 = arith.constant 0 : index
    %142 = vector.load %arg18[%c0_70, %c0_71] : memref<8x32xf32, #tpu.memory_space<vmem>>, vector<8x32xf32>
    tpu.vector_store %arg18[%c0_70, %c0_71], %140 {strides = array<i32>} : memref<8x32xf32, #tpu.memory_space<vmem>>, vector<8x32xf32>,
    return
  }
  func.func @transform_0(%arg0: i32, %arg1: i32) -> (i32, i32) {
    %c0_i32 = arith.constant 0 : i32
    %c0_i32_0 = arith.constant 0 : i32
    return %arg0, %c0_i32 : i32, i32
  }
  func.func @transform_1(%arg0: i32, %arg1: i32) -> (i32, i32, i32) {
    %c0_i32 = arith.constant 0 : i32
    %c0_i32_0 = arith.constant 0 : i32
    %c0_i32_1 = arith.constant 0 : i32
    return %arg0, %c0_i32, %c0_i32_0 : i32, i32, i32
  }
  func.func @transform_2(%arg0: i32, %arg1: i32) -> (i32, i32) {
    %c0_i32 = arith.constant 0 : i32
    %c0_i32_0 = arith.constant 0 : i32
    %c0_i32_1 = arith.constant 0 : i32
    return %c0_i32, %c0_i32_0 : i32, i32
  }
  func.func @transform_3(%arg0: i32, %arg1: i32) -> (i32, i32) {
    %c0_i32 = arith.constant 0 : i32
    %c0_i32_0 = arith.constant 0 : i32
    %c0_i32_1 = arith.constant 0 : i32
    return %c0_i32, %c0_i32_0 : i32, i32
  }
  func.func @transform_4(%arg0: i32, %arg1: i32) -> (i32, i32, i32) {
    %c0_i32 = arith.constant 0 : i32
    %c0_i32_0 = arith.constant 0 : i32
    %c0_i32_1 = arith.constant 0 : i32
    return %arg1, %c0_i32, %c0_i32_0 : i32, i32, i32
  }
  func.func @transform_5(%arg0: i32, %arg1: i32) -> (i32, i32, i32) {
    %c0_i32 = arith.constant 0 : i32
    %c0_i32_0 = arith.constant 0 : i32
    %c0_i32_1 = arith.constant 0 : i32
    return %arg1, %c0_i32, %c0_i32_0 : i32, i32, i32
  }
  func.func @transform_6(%arg0: i32, %arg1: i32) -> (i32, i32, i32) {
    %c0_i32 = arith.constant 0 : i32
    %c0_i32_0 = arith.constant 0 : i32
    %c0_i32_1 = arith.constant 0 : i32
    return %arg1, %c0_i32, %c0_i32_0 : i32, i32, i32
  }
  func.func @transform_7(%arg0: i32, %arg1: i32) -> (i32, i32, i32) {
    %c0_i32 = arith.constant 0 : i32
    %c0_i32_0 = arith.constant 0 : i32
    %c0_i32_1 = arith.constant 0 : i32
    return %arg1, %c0_i32, %c0_i32_0 : i32, i32, i32
  }
  func.func @transform_8(%arg0: i32, %arg1: i32) -> (i32, i32, i32) {
    %c0_i32 = arith.constant 0 : i32
    %c0_i32_0 = arith.constant 0 : i32
    %c0_i32_1 = arith.constant 0 : i32
    return %arg1, %c0_i32, %c0_i32_0 : i32, i32, i32
  }
  func.func @transform_9(%arg0: i32, %arg1: i32) -> (i32, i32, i32) {
    %c0_i32 = arith.constant 0 : i32
    %c0_i32_0 = arith.constant 0 : i32
    %c0_i32_1 = arith.constant 0 : i32
    return %arg1, %c0_i32, %c0_i32_0 : i32, i32, i32
  }
  func.func @transform_10(%arg0: i32, %arg1: i32) -> (i32, i32, i32) {
    %c0_i32 = arith.constant 0 : i32
    %c0_i32_0 = arith.constant 0 : i32
    %c0_i32_1 = arith.constant 0 : i32
    return %arg1, %c0_i32, %c0_i32_0 : i32, i32, i32
  }
  func.func @transform_11(%arg0: i32, %arg1: i32) -> (i32, i32, i32) {
    %c0_i32 = arith.constant 0 : i32
    %c0_i32_0 = arith.constant 0 : i32
    %c0_i32_1 = arith.constant 0 : i32
    return %arg1, %c0_i32, %c0_i32_0 : i32, i32, i32
  }
  func.func @transform_12(%arg0: i32, %arg1: i32) -> (i32, i32, i32) {
    %c0_i32 = arith.constant 0 : i32
    %c0_i32_0 = arith.constant 0 : i32
    %c0_i32_1 = arith.constant 0 : i32
    return %arg1, %c0_i32, %c0_i32_0 : i32, i32, i32
  }
  func.func @transform_13(%arg0: i32, %arg1: i32) -> (i32, i32, i32) {
    %c0_i32 = arith.constant 0 : i32
    %c0_i32_0 = arith.constant 0 : i32
    %c0_i32_1 = arith.constant 0 : i32
    return %arg1, %c0_i32, %c0_i32_0 : i32, i32, i32
  }
  func.func @transform_14(%arg0: i32, %arg1: i32) -> (i32, i32, i32) {
    %c0_i32 = arith.constant 0 : i32
    %c0_i32_0 = arith.constant 0 : i32
    %c0_i32_1 = arith.constant 0 : i32
    return %arg1, %c0_i32, %c0_i32_0 : i32, i32, i32
  }
  func.func @transform_15(%arg0: i32, %arg1: i32) -> (i32, i32, i32) {
    %c0_i32 = arith.constant 0 : i32
    %c0_i32_0 = arith.constant 0 : i32
    %c0_i32_1 = arith.constant 0 : i32
    return %arg1, %c0_i32, %c0_i32_0 : i32, i32, i32
  }
  func.func @transform_16(%arg0: i32, %arg1: i32) -> (i32, i32) {
    %c0_i32 = arith.constant 0 : i32
    %c0_i32_0 = arith.constant 0 : i32
    return %arg0, %c0_i32 : i32, i32
  }
}

</mosaic_0001>

<bundles_post_ra>
// kernel: tpu_custom_call.1
= control target key start
LH: loop header
LB: loop body
LE: loop exit
PB: predicated region body
PF: predicated region fallthrough
CT: control target
= control target key end

     0   :  { %s2878_s0 = inlined_call_operand.hbm [shape: f32[16,32], index: 0, kind: input, shape index: {}]   ;;  %s2879_s1 = inlined_call_operand.hbm [shape: f32[2,1,8], index: 1, kind: input, shape index: {}]   ;;  %s2880_s2 = inlined_call_operand.hbm [shape: f32[1,32], index: 2, kind: input, shape index: {}]   ;;  %s2881_s3 = inlined_call_operand.hbm [shape: f32[1,32], index: 3, kind: input, shape index: {}]   ;;  %s2882_s4 = inlined_call_operand.vmem [shape: f32[2,32,96], index: 4, kind: input, shape index: {}]   ;;  %s2883_s5 = inlined_call_operand.vmem [shape: f32[2,1,96], index: 5, kind: input, shape index: {}]   ;;  %s2884_s6 = inlined_call_operand.vmem [shape: f32[2,32,32], index: 6, kind: input, shape index: {}]   ;;  %s2885_s7 = inlined_call_operand.vmem [shape: f32[2,1,32], index: 7, kind: input, shape index: {}]   ;;  %s2886_s8 = inlined_call_operand.vmem [shape: f32[2,1,32], index: 8, kind: input, shape index: {}]   ;;  %s2887_s9 = inlined_call_operand.vmem [shape: f32[2,1,32], index: 9, kind: input, shape index: {}]   ;;  %s2888_s10 = inlined_call_operand.vmem [shape: f32[2,32,64], index: 10, kind: input, shape index: {}]   ;;  %s2889_s11 = inlined_call_operand.vmem [shape: f32[2,1,64], index: 11, kind: input, shape index: {}]   ;;  %s2890_s12 = inlined_call_operand.vmem [shape: f32[2,64,32], index: 12, kind: input, shape index: {}]   ;;  %s2891_s13 = inlined_call_operand.vmem [shape: f32[2,1,32], index: 13, kind: input, shape index: {}]   ;;  %s2892_s14 = inlined_call_operand.vmem [shape: f32[2,1,32], index: 14, kind: input, shape index: {}]   ;;  %s2893_s15 = inlined_call_operand.vmem [shape: f32[2,1,32], index: 15, kind: input, shape index: {}]   ;;  %s2894_s16 = inlined_call_operand.hbm [shape: f32[16,32], index: 16, kind: output, shape index: {}]  }
   0x1   :  { %2910 = sst [smem:[#allocation29_spill]] %s2878_s0 }
   0x2   :  { %2911 = sst [smem:[#allocation30_spill]] %s2879_s1 }
   0x3   :  { %2912 = sst [smem:[#allocation31_spill]] %s2880_s2 }
   0x4   :  { %2913 = sst [smem:[#allocation32_spill]] %s2881_s3 }
   0x5   :  { %2914 = sst [smem:[#allocation33_spill]] %s2882_s4 }
   0x6   :  { %2915 = sst [smem:[#allocation34_spill]] %s2884_s6 }
   0x7   :  { %2916 = sst [smem:[#allocation35_spill]] %s2887_s9 }
   0x8   :  { %2917 = sst [smem:[#allocation36_spill]] %s2888_s10 }
   0x9   :  { %2918 = sst [smem:[#allocation37_spill]] %s2889_s11 }
   0xa   :  { %2919 = sst [smem:[#allocation38_spill]] %s2890_s12 }
   0xb   :  { %2920 = sst [smem:[#allocation39_spill]] %s2891_s13 }
   0xc   :  { %2921 = sst [smem:[#allocation40_spill]] %s2892_s14 }
   0xd   :  { %2922 = sst [smem:[#allocation41_spill]] %s2893_s15 }
   0xe   :  { %2923 = sst [smem:[#allocation42_spill]] %s2894_s16 }
   0xf   :  { %21 = vsyncpa [#allocation4], 0 }
  0x10   :  { %23 = vsyncpa [#allocation4 + $0x1], 0 }
  0x11   :  { %24 = vsyncpa [#allocation7], 0 }
  0x12   :  { %26 = vsyncpa [#allocation7 + $0x1], 0 }
  0x13   :  { %27 = vsyncpa [#allocation10], 0 }
  0x14   :  { %28 = vsyncpa [#allocation5], 0 }
  0x15   :  { %30 = vsyncpa [#allocation5 + $0x1], 0  ;;  %s2453_s21 = smov 0   ;;  %s2455_s22 = smov 0  }
  0x16   :  { %s2457_s23 = smov 0   ;;  %s2459_s24 = smov 0  }
  0x17   :  { %s2461_s25 = smov 0   ;;  %s2463_s26 = smov 0  }
  0x18   :  { %s2465_s27 = smov 0   ;;  %s2467_s28 = smov 0  }
  0x19 LB: > { %2924 = sst [smem:[#allocation17_spill]] %s2325_s21  ;;  %s2494_s29 = sadd.s32 4294967295, %s2353_s28   ;;  %s2353_s28 = sphi %s2467_s28, %s36_s28   ;;  %s2349_s27 = sphi %s2465_s27, %s2986_s27   ;;  %s2345_s26 = sphi %s2463_s26, %s2985_s26   ;;  %s2341_s25 = sphi %s2461_s25, %s2984_s25   ;;  %s2337_s24 = sphi %s2459_s24, %s2983_s24   ;;  %s2333_s23 = sphi %s2457_s23, %s2982_s23   ;;  %s2329_s22 = sphi %s2455_s22, %s2981_s22   ;;  %s2325_s21 = sphi %s2453_s21, %s2980_s21  }
  0x1a   : > { %2925 = sst [smem:[#allocation18_spill]] %s2329_s22  ;;  %s1854_s30 = sadd.s32 4294967294, %s2353_s28  }
  0x1b   : > { %2926 = sst [smem:[#allocation19_spill]] %s2333_s23  ;;  %p68_p0 = scmp.ne.s32.totalorder %s2329_s22, %s2325_s21 }
  0x1c   : > { %2927 = sst [smem:[#allocation20_spill]] %s2341_s25  ;;  %p2898_p1 = scmp.eq.s32.totalorder %s2494_s29, 0 }
  0x1d   : > { %2928 = sst [smem:[#allocation21_spill]] %s2345_s26  ;;  %p478_p3 = scmp.eq.s32.totalorder %s1854_s30, 3 }
  0x1e   : > { %2929 = sst [smem:[#allocation22_spill]] %s2349_s27  ;;  %p2503_p4 = por %p2898_p1, %p68_p0 }
  0x1f   : > { %2930 = sst [smem:[#allocation23_spill]] %s2353_s28  ;;  %p1855_p5 = scmp.ge.s32.totalorder %s2353_s28, 1 }
  0x20   : > { %s2931_s0 = scalar_select %p2503_p4, 1, 0 }
  0x21   : > { %p2508_p6 = por %p478_p3, %p68_p0  ;;  %p485_p7 = scmp.lt.s32.totalorder %s2353_s28, 5 }
  0x22   : > { %s2355_s19 = smov [#allocation8]   ;;  %s2356_s30 = smov [#allocation9]  }
  0x23   : > { %s2932_s17 = scalar_select %p2508_p6, 1, 0 }
  0x24   : > { %p2513_p8 = pnand %p1855_p5, %p485_p7  ;;  %s498_s20 = sshll.u32 %s2355_s19, 4  ;;  %s499_s20 = int_to_ptr.vmem [resolvable:$true] %s498_s20 }
  0x25   : > { %2933 = sst [smem:[#allocation24_spill]] %s2932_s17  ;;  %s509_s21 = sshll.u32 %s2356_s30, 4  ;;  %s510_s21 = int_to_ptr.vmem [resolvable:$true] %s509_s21 }
  0x26   : > { %p2023_p9 = pneg %p2513_p8  ;;  %s2148_s17 = scalar_lea.vmem %s499_s20, 16 }
  0x27   : > { %p2149_p12 = scmp.ne.s32.totalorder %s499_s20, %s2148_s17  ;;  %s2155_s19 = scalar_lea.vmem %s499_s20, 32 }
  0x28   : > { %p2521_p10 = pnand %p2023_p9, %p2898_p1  ;;  %p2156_p3 = scmp.lt.s32.totalorder %s499_s20, %s499_s20 }
  0x29   : > { %p2157_p5 = scmp.lt.s32.totalorder %s2155_s19, %s2148_s17 }
  0x2a   : > { %p2139_p11 = pneg %p2521_p10 }
  0x2b   : > { %p2158_p7 = por %p2157_p5, %p2156_p3 }
  0x2c   : > { %p2151_p13 = pnand %p2149_p12, %p2139_p11 }
  0x2e   : > { %p2152_p0 = pneg %p2151_p13 }
  0x30   : > { %p2159_p2 = pnand %p2158_p7, %p2152_p0 }
  0x32   : > { %2162 = shalt.err (!%p2159_p2)
}
  0x33   : > { %s2936_s2 = sld [smem:[#allocation31_spill]]  ;;  %s2174_s15 = scalar_lea.vmem %s510_s21, 16 }
  0x34   : > { %p2175_p9 = scmp.ne.s32.totalorder %s510_s21, %s2174_s15  ;;  %s2181_s14 = scalar_lea.vmem %s510_s21, 32 }
  0x35   : > { %p2182_p13 = scmp.lt.s32.totalorder %s510_s21, %s510_s21  ;;  %p2183_p6 = scmp.lt.s32.totalorder %s2181_s14, %s2174_s15 }
  0x36   : > { %p2177_p1 = pnand %p2175_p9, %p2139_p11 }
  0x37   : > { %p2184_p4 = por %p2183_p6, %p2182_p13 }
  0x38   : > { %p2178_p12 = pneg %p2177_p1 }
  0x39   : > { %2026 = dma.hbm_to_vmem [thread:$0]  (!%p2521_p10), %s2936_s2, 16, %s499_s20, [#allocation7]  }
  0x3a   : > { %p2185_p3 = pnand %p2184_p4, %p2178_p12 }
  0x3c   : > { %2188 = shalt.err (!%p2185_p3)
}
  0x3d   : > { %s2937_s3 = sld [smem:[#allocation32_spill]]  ;;  %s45_s14 = sadd.s32 1, %s2345_s26 }
  0x3e   : > { %s48_s15 = sadd.s32 1, %s2349_s27  ;;  %p46_p1 = scmp.ge.s32.totalorder %s45_s14, 2 }
  0x3f   : > { %s55_s16 = sadd.s32 1, %s2333_s23  ;;  %p62_p2 = scmp.ne.s32.totalorder %s2333_s23, %s2329_s22 }
  0x40   : > { %p63_p4 = scmp.eq.s32.totalorder %s2353_s28, 0  ;;  %s2988_s14 = smov (%p46_p1, %s45_s14), 0 }
  0x41   : > { %2938 = sst [smem:[#allocation25_spill]] %s2988_s14  ;;  %s2990_s15 = smov (!%p46_p1, %s48_s15), %s2349_s27 }
  0x42   : > { %p2552_p6 = por %p63_p4, %p62_p2  ;;  %p2940_p11 = scmp.eq.s32.totalorder %s2494_s29, 3 }
  0x43   : > { %2029 = dma.hbm_to_vmem [thread:$0]  (!%p2521_p10), %s2937_s3, 16, %s510_s21, [#allocation10]  }
  0x44   : > { %p2558_p0 = por %p2940_p11, %p62_p2  ;;  %p50_p10 = scmp.ge.s32.totalorder %s2990_s15, 2 }
  0x45   : > { %p2043_p5 = scmp.lt.s32.totalorder %s2353_s28, 4  ;;  %s2564_s21 = sand.u32 1, %s2333_s23  }
  0x46   : > { %s2941_s20 = scalar_select %p2558_p0, 1, 0 }
  0x47   : > { %s1860_s30 = sshll.u32 %s2349_s27, 7  ;;  %s2992_s15 = smov (%p50_p10, %s2990_s15), 0 }
  0x48   : > { %2942 = sst [smem:[#allocation26_spill]] %s2941_s20  ;;  %s1859_s17 = sshll.u32 %s2564_s21, 3 }
  0x49   : > { %2943 = sst [smem:[#allocation27_spill]] %s2992_s15  ;;  %s52_s19 = ssub.s32 %s2349_s27, %s2992_s15 }
  0x4a   : > { %p53_p7 = scmp.eq.s32.totalorder %s52_s19, 0  ;;  %s2944_s14 = sld [smem:[#allocation29_spill]] }
  0x4b   : > { %s524_s13 = scalar_lea.vmem [#allocation3], %s1859_s17  ;;  %p2577_p9 = pnand %p2043_p5, %p2552_p6 }
  0x4c   : > { %s531_s12 = sshll.u32 %s524_s13, 4  ;;  %s521_s10 = scalar_lea.sflag [#allocation4], %s2564_s21  ;;  %s532_s12 = int_to_ptr.vmem [resolvable:$true] %s531_s12 }
  0x4d   : > { %s2582_s11 = scalar_select %p53_p7, %s2333_s23, %s55_s16  }
  0x4e   : > { %p2191_p12 = pneg %p2577_p9  ;;  %s2202_s19 = scalar_lea.vmem %s532_s12, 128 }
  0x4f   : > { %2946 = sst [smem:[#allocation28_spill]] %s2582_s11  ;;  %p2203_p13 = scmp.ne.s32.totalorder %s532_s12, %s2202_s19 }
  0x50   : > { %s529_s26 = scalar_lea.hbm %s2944_s14, %s1860_s30  ;;  %s2357_s2 = smov [#allocation3]  }
  0x51   : > { %p2205_p3 = pnand %p2203_p13, %p2191_p12  ;;  %s2207_s3 = sshll.u32 %s2357_s2, 4  ;;  %s2208_s3 = int_to_ptr.vmem [resolvable:$false] %s2207_s3 }
  0x52   : > { %s2209_s13 = scalar_lea.vmem %s2208_s3, 256  ;;  %p2210_p2 = scmp.lt.s32.totalorder %s532_s12, %s2208_s3 }
  0x53   : > { %p2206_p1 = pneg %p2205_p3  ;;  %p2211_p4 = scmp.lt.s32.totalorder %s2209_s13, %s2202_s19 }
  0x55   : > { %p2212_p6 = por %p2211_p4, %p2210_p2 }
  0x57   : > { %p2213_p11 = pnand %p2212_p6, %p2206_p1 }
  0x59   : > { %2216 = shalt.err (!%p2213_p11)
}
  0x5a   : > { %2033 = dma.hbm_to_vmem [thread:$0]  (!%p2577_p9), %s529_s26, 128, %s532_s12, %s521_s10  }
  0x5b   : > { %s538_s14 = sand.u32 1, %s2353_s28   ;;  %s1861_s16 = sshll.u32 %s2349_s27, 4 }
  0x5c   : > { %s2947_s1 = sld [smem:[#allocation30_spill]]  ;;  %s541_s2 = scalar_lea.vmem [#allocation6], %s2564_s21 }
  0x5d   : > { %s548_s15 = sshll.u32 %s541_s2, 4  ;;  %s539_s19 = scalar_lea.sflag [#allocation7], %s538_s14  ;;  %s549_s15 = int_to_ptr.vmem [resolvable:$true] %s548_s15 }
  0x5e   : > { %s2230_s3 = scalar_lea.vmem %s549_s15, 16  ;;  %s2358_s13 = smov [#allocation6]  }
  0x5f   : > { %p2231_p10 = scmp.ne.s32.totalorder %s549_s15, %s2230_s3  ;;  %s2235_s11 = sshll.u32 %s2358_s13, 4  ;;  %s2236_s11 = int_to_ptr.vmem [resolvable:$false] %s2235_s11 }
  0x60   : > { %s2237_s10 = scalar_lea.vmem %s2236_s11, 32  ;;  %p2238_p13 = scmp.lt.s32.totalorder %s549_s15, %s2236_s11 }
  0x61   : > { %p2233_p5 = pnand %p2231_p10, %p2191_p12  ;;  %p2239_p3 = scmp.lt.s32.totalorder %s2237_s10, %s2230_s3 }
  0x62   : > { %s546_s17 = scalar_lea.hbm %s2947_s1, %s1861_s16 }
  0x63   : > { %p2234_p7 = pneg %p2233_p5  ;;  %p2240_p1 = por %p2239_p3, %p2238_p13 }
  0x65   : > { %p2241_p2 = pnand %p2240_p1, %p2234_p7 }
  0x67   : > { %2244 = shalt.err (!%p2241_p2)
}
  0x68   : > { %2036 = dma.hbm_to_vmem [thread:$0]  (!%p2577_p9), %s546_s17, 16, %s549_s15, %s539_s19  }
  0x69   : > { %637 = sbr.rel (%p2513_p8) target bundleno = 2838 (0xb16), region = 84  ;;  %s2606_s12 = sand.u32 (!%p2513_p8), 1, %s2329_s22  }
  0x6a   : > { %s2904_s26 = sshll.u32 (!%p2513_p8), %s2606_s12, 3  ;;  %s640_s21 = scalar_lea.sflag (!%p2513_p8), [#allocation4], %s2606_s12 }
  0x6b   : > { %s2612_s11 = scalar_lea.vmem (!%p2513_p8), [#allocation3], %s2904_s26  ;;  %p2948_p12 = scmp.ne.s32.totalorder (!%p2513_p8), %s2931_s0, 0 }
  0x6e   : > { %2304 = dma.done.wait (%p2948_p12), %s640_s21, 128  }
  0x6f   : > { %2306 = vsyncadd (%p2948_p12), %s640_s21, 4294967168  ;;  %s648_s18 = sand.u32 1, %s2494_s29  }
  0x70   : > { %s649_s15 = scalar_lea.sflag [#allocation7], %s648_s18 }
  0x71   : > { %2308 = dma.done.wait (%p2948_p12), %s649_s15, 16  }
  0x72   : > { %2310 = vsyncadd (%p2948_p12), %s649_s15, 4294967280  ;;  %p2949_p8 = scmp.eq.s32.totalorder %s2494_s29, 0 }
  0x74   : > { %2312 = dma.done.wait (%p2949_p8), [#allocation7], 16   ;;  %p2950_p9 = pmov %p2949_p8 }
  0x75   : > { %p2951_p4 = pmov %p2949_p8 }
  0x76   : > { %2314 = vsyncadd (%p2950_p9), [#allocation7], 4294967280 }
  0x77   : > { %2316 = dma.done.wait (%p2951_p4), [#allocation10], 16   ;;  %p2952_p6 = pmov %p2951_p4 }
  0x78   : > { %p756_p11 = scmp.lt.s32.totalorder %s2337_s24, 1  ;;  %s2953_s4 = sld [smem:[#allocation33_spill]] }
  0x79   : > { %2318 = vsyncadd (%p2952_p6), [#allocation10], 4294967280  ;;  %s2954_s6 = sld [smem:[#allocation34_spill]]  ;;  %s2962_s19 = sshll.u32 %s2606_s12, 3 }
  0x7a   : > { %s2634_s14 = scalar_select %p756_p11, %s2337_s24, 1 }
  0x7b   : > { %s2956_s1 = sld [smem:[#allocation36_spill]]  ;;  %p1875_p10 = scmp.ne.s32.totalorder %s2337_s24, 0 }
  0x7c   : > { %s1901_s0 = sshll.u32 %s2634_s14, 5  ;;  %s1904_s23 = sshll.u32 %s2634_s14, 6 }
  0x7d   : > { %s2958_s18 = sld [smem:[#allocation38_spill]] }
  0x7e   : > { %s2644_s2 = scalar_lea.vmem %s2953_s4, %s1901_s0  ;;  %s2959_s26 = sld [smem:[#allocation39_spill]] }
  0x7f   : > { %s2649_s13 = scalar_lea.vmem %s2954_s6, %s1901_s0  ;;  %s2957_s6 = sld [smem:[#allocation37_spill]] }
  0x80   : > { %s2960_s28 = sld [smem:[#allocation40_spill]] }
  0x81   : > { %s2666_s4 = scalar_lea.vmem %s2956_s1, %s1901_s0  ;;  %s2961_s17 = sld [smem:[#allocation41_spill]] }
  0x83   : > { %s2676_s22 = scalar_lea.vmem %s2958_s18, %s1904_s23  ;;  %803 = sbr.rel (%p1875_p10) target bundleno = 446 (0x1be), region = 104 }
  0x84   : > { %s793_s16 = scalar_lea.vmem %s2959_s26, %s2634_s14 }
  0x85   : > { %s785_s27 = scalar_lea.vmem %s2957_s6, %s2634_s14  ;;  %s2692_s6 = scalar_lea.vmem [#allocation11], %s2962_s19 }
  0x86   : > { %s796_s30 = scalar_lea.vmem %s2960_s28, %s2634_s14 }
  0x87   : > { %s799_s9 = scalar_lea.vmem %s2961_s17, %s2634_s14 }
  0x88   : > { %v804_v0 = vld [vmem:[%s2612_s11] sm:$0xff]  ;;  %vm807_vm0 = vcmask 261120   ;;  %v1876_v11 = vld [vmem:[#allocation8] ss:$0 sm:$0xff]  ;;  %v1877_v13 = vld [vmem:[#allocation9] ss:$0 sm:$0xff] }
  0x89   : > { %v808_v1 = vsel %vm807_vm0, %v804_v0, 0.0 }
  0x8a   : > { %809 = vadd.xlane.f32.xlu0 %v808_v1 }
 0x113   : > { %v810_v2 = vpop.xlane.xlu0 %809 }
 0x114   : > { %v812_v3 = vmul.f32 0.03125, %v810_v2 }
 0x116   : > { %v813_v4 = vsub.f32 %v804_v0, %v812_v3 }
 0x118   : > { %v814_v5 = vmul.f32 %v813_v4, %v813_v4 }
 0x11a   : > { %v815_v6 = vsel %vm807_vm0, %v814_v5, 0.0 }
 0x11b   : > { %816 = vadd.xlane.f32.xlu0 %v815_v6 }
 0x1a4   : > { %v817_v7 = vpop.xlane.xlu0 %816 }
 0x1a5   : > { %v818_v8 = vmul.f32 0.03125, %v817_v7 }
 0x1a7   : > { %v819_v9 = vadd.f32 1e-12, %v818_v8 }
 0x1a9   : > { %2121 = vrsqrt.f32 %v819_v9 }
 0x1b6   : > { %v2122_v10 = vpop.eup %2121 }
 0x1b7   : > { %v821_v12 = vmul.f32 %v2122_v10, %v813_v4 }
 0x1b9   : > { %v828_v14 = vmul.f32 %v1876_v11, %v821_v12 }
 0x1bb   : > { %v835_v15 = vadd.f32 %v1877_v13, %v828_v14 }
 0x1bd   : > { %836 = vst.msk [vmem:[#allocation2] sm:$0xff] %vm807_vm0, %v835_v15 }
 0x1be PF: > { %v842_v16 = vld [vmem:[%s2644_s2 + $0x18] sm:$0xff]  ;;  %v2359_v17 = vmov 0.0   ;;  %v841_v18 = vld [vmem:[%s2644_s2 + $0x10] sm:$0xff]  ;;  %vm2360_vm1 = vmmov 0   ;;  %v840_v19 = vld [vmem:[%s2644_s2 + $0x8] sm:$0xff]  ;;  %vm850_vm2 = vcmask 261120   ;;  %s2963_s28 = scalar_lea.vmem %s2883_s5, %s2634_s14  ;;  %s2965_s20 = scalar_lea.vmem %s2885_s7, %s2634_s14 }
 0x1bf   : > { %1937 = vmatprep.subr.mxu1 %v2359_v17  ;;  %1945 = vmatprep.mubr.msk.f32.mxu1 %vm2360_vm1, %v2359_v17  ;;  %v839_v20 = vld [vmem:[%s2644_s2] sm:$0xff]  ;;  %s2361_s26 = smov 112   ;;  %s2362_s11 = smov 96   ;;  %vm927_vm3 = vcmask 130048   ;;  %vm1010_vm4 = vcmask 64512   ;;  %v1273_v58 = vld [vmem:[%s2649_s13 + $0x18] sm:$0xff] }
 0x1c0   : > { %1938 = vmatpush3.msra.mxu1 %v842_v16  ;;  %1958 = vmatprep.subr.mxu0 %v2359_v17  ;;  %v1878_v22 = vld [vmem:[%s2963_s28] ss:$0 sm:$0xff]  ;;  %s2363_s25 = smov 80   ;;  %s2964_s2 = scalar_lea.vmem [#allocation6], %s2606_s12  ;;  %v1272_v59 = vld [vmem:[%s2649_s13 + $0x10] sm:$0xff]  ;;  %v1271_v60 = vld [vmem:[%s2649_s13 + $0x8] sm:$0xff] }
 0x1c1   : > { %1939 = vmatprep.subr.mxu1 %v2359_v17  ;;  %1960 = vmatprep.mubr.msk.f32.mxu0 %vm2360_vm1, %v2359_v17  ;;  %v1882_v30 = vld [vmem:[%s2964_s2] ss:$0 sm:$0xff]  ;;  %s2364_s18 = smov 48   ;;  %s2365_s3 = smov 64   ;;  %v1388_v15 = vld [vmem:[%s2666_s4 + $0x18] sm:$0xff]  ;;  %v1387_v16 = vld [vmem:[%s2666_s4 + $0x10] sm:$0xff] }
 0x1c2   : > { %1940 = vmatpush3.msra.mxu1 %v841_v18  ;;  %v1270_v61 = vld [vmem:[%s2649_s13] sm:$0xff]  ;;  %s2366_s10 = smov 16   ;;  %v1386_v18 = vld [vmem:[%s2666_s4 + $0x8] sm:$0xff]  ;;  %s2966_s1 = scalar_lea.vmem %s2886_s8, %s2634_s14  ;;  %vm1493_vm5 = vcmask 523264  }
 0x1c3   : > { %1941 = vmatprep.subr.mxu1 %v2359_v17  ;;  %v1887_v4 = vld [vmem:[%s2965_s20] ss:$0 sm:$0xff]  ;;  %s2967_s17 = sld [smem:[#allocation35_spill]]  ;;  %s1613_s20 = sshll.u32 %s2692_s6, 4  ;;  %s1614_s20 = int_to_ptr.vmem [resolvable:$true] %s1613_s20 }
 0x1c4   : > { %1942 = vmatpush3.msra.mxu1 %v840_v19  ;;  %v2711_v21 = vld [vmem:[#allocation2] sm:$0xff] }
 0x1c5   : > { %1943 = vmatprep.subr.mxu1 %v2359_v17  ;;  %v1385_v19 = vld [vmem:[%s2666_s4] sm:$0xff]  ;;  %s2245_s4 = scalar_lea.vmem %s1614_s20, 128 }
 0x1c6   : > { %1944 = vmatpush3.msra.mxu1 %v839_v20  ;;  %p2246_p5 = scmp.ne.s32.totalorder %s1614_s20, %s2245_s4 }
 0x1c7   : > { %1946 = vmatmul.mubr.msk.f32.vlgmr.msra.gmra.mxu1 %vm850_vm2, %v2711_v21  ;;  %1948 = vmatprep.subr.mxu1 %v2359_v17 }
 0x1c8   : > { %1950 = vmatprep.mubr.msk.f32.mxu1 %vm2360_vm1, %v2359_v17  ;;  %p2247_p7 = pnand %p2246_p5, %p2558_p0 }
 0x1c9   : > { %s2968_s19 = scalar_lea.vmem %s2967_s17, %s2634_s14 }
 0x1ca   : > { %p2248_p13 = pneg %p2247_p7 }
 0x287   : > { %v920_v23 = vpop.f32.mrf.mxu1 }
 0x288   : > { %v921_v24 = vadd.f32 %v1878_v22, %v920_v23 }
 0x289   : > { %v1947_v25 = vpop.f32.mrf.mxu1 }
 0x28a   : > { %1098 = vrot.lane.b32.xlu1 %v921_v24, %s2361_s26  ;;  %925 = vrot.lane.b32.xlu0 %v921_v24, %s2362_s11 }
 0x28e   : > { %1100 = vrot.lane.b32.xlu0 %v921_v24, %s2363_s25 }
 0x2fc   : > { %v926_v26 = vpop.permute.xlu0 %925  ;;  %v1099_v28 = vpop.permute.xlu1 %1098 }
 0x2fd   : > { %1949 = vmatpush3.xpose.msk.msra.mxu1 %vm927_vm3, %v926_v26  ;;  %v1890_v26 = vld [vmem:[%s2968_s19] ss:$0 sm:$0xff] }
 0x2fe   : > { %1953 = vmatprep.subr.mxu1 %v2359_v17 }
 0x300   : > { %1951 = vmatmul.mubr.msk.f32.vlgmr.msra.gmra.mxu1 %vm927_vm3, %v921_v24  ;;  %v1101_v27 = vpop.permute.xlu0 %1100 }
 0x301   : > { %1959 = vmatpush3.xpose.msk.msra.mxu0 %vm927_vm3, %v1101_v27  ;;  %1955 = vmatprep.mubr.msk.f32.mxu1 %vm2360_vm1, %v2359_v17 }
 0x302   : > { %1968 = vmatprep.subr.mxu0 %v2359_v17 }
 0x304   : > { %1961 = vmatmul.mubr.msk.f32.vlgmr.msra.gmra.mxu0 %vm927_vm3, %v1099_v28 }
 0x305   : > { %1976 = vmatprep.mubr.msk.f32.mxu0 %vm2360_vm1, %v2359_v17  ;;  %1969 = vmatpush3.msra.mxu0 %v1273_v58 }
 0x306   : > { %1970 = vmatprep.subr.mxu0 %v2359_v17 }
 0x307   : > { %1971 = vmatpush3.msra.mxu0 %v1272_v59 }
 0x308   : > { %1972 = vmatprep.subr.mxu0 %v2359_v17 }
 0x309   : > { %1973 = vmatpush3.msra.mxu0 %v1271_v60 }
 0x30a   : > { %1974 = vmatprep.subr.mxu0 %v2359_v17 }
 0x30b   : > { %1975 = vmatpush3.msra.mxu0 %v1270_v61 }
 0x30c   : > { %1990 = vmatprep.subr.mxu0 %v2359_v17 }
 0x3c0   : > { %v998_v29 = vpop.f32.mrf.mxu1 }
 0x3c1   : > { %v1002_v31 = vmul.f32 0.25, %v998_v29  ;;  %v1485_v29 = vld [vmem:[%s2676_s22 + $0x38] sm:$0xff] }
 0x3c2   : > { %v1952_v32 = vpop.f32.mrf.mxu1 }
 0x3c3   : > { %v1009_v33 = vadd.f32 %v1882_v30, %v1002_v31  ;;  %v1483_v31 = vld [vmem:[%s2676_s22 + $0x28] sm:$0xff]  ;;  %v1482_v32 = vld [vmem:[%s2676_s22 + $0x20] sm:$0xff] }
 0x3c4   : > { %v1172_v34 = vpop.f32.mrf.mxu0 }
 0x3c5   : > { %v1176_v35 = vmul.f32 0.25, %v1172_v34  ;;  %v1011_v36 = vsel %vm1010_vm4, %v1009_v33, -inf  ;;  %v1480_v34 = vld [vmem:[%s2676_s22 + $0x10] sm:$0xff] }
 0x3c6   : > { %v1962_v37 = vpop.f32.mrf.mxu0  ;;  %1012 = vmax.xlane.f32.xlu1 %v1011_v36  ;;  %v1478_v36 = vld [vmem:[%s2676_s22] sm:$0xff] }
 0x3c7   : > { %v1177_v38 = vadd.f32 %v1882_v30, %v1176_v35  ;;  %v1484_v30 = vld [vmem:[%s2676_s22 + $0x30] sm:$0xff]  ;;  %v1479_v35 = vld [vmem:[%s2676_s22 + $0x8] sm:$0xff]  ;;  %v1891_v37 = vld [vmem:[%s785_s27] ss:$0 sm:$0xff]  ;;  %s2971_s27 = sld [smem:[#allocation20_spill]] }
 0x3c9   : > { %v1178_v39 = vsel %vm1010_vm4, %v1177_v38, -inf }
 0x3ca   : > { %1179 = vmax.xlane.f32.xlu0 %v1178_v39 }
 0x3cd   : > { %s1898_s13 = sshll.u32 %s2971_s27, 7 }
 0x44f   : > { %v1013_v40 = vpop.xlane.xlu1 %1012 }
 0x450   : > { %v1014_v41 = vsub.f32 %v1009_v33, %v1013_v40  ;;  %v1481_v33 = vld [vmem:[%s2676_s22 + $0x18] sm:$0xff] }
 0x452   : > { %v1015_v42 = vmul.f32 1.442695, %v1014_v41 }
 0x453   : > { %v1180_v43 = vpop.xlane.xlu0 %1179 }
 0x454   : > { %2123 = vpow2.f32 %v1015_v42  ;;  %v1181_v44 = vsub.f32 %v1177_v38, %v1180_v43 }
 0x456   : > { %v1182_v45 = vmul.f32 1.442695, %v1181_v44 }
 0x458   : > { %2125 = vpow2.f32 %v1182_v45 }
 0x461   : > { %v2124_v46 = vpop.eup %2123 }
 0x462   : > { %v1017_v47 = vsel %vm1010_vm4, %v2124_v46, 0.0 }
 0x463   : > { %1018 = vadd.xlane.f32.xlu0 %v1017_v47 }
 0x465   : > { %v2126_v48 = vpop.eup %2125 }
 0x466   : > { %v1184_v49 = vsel %vm1010_vm4, %v2126_v48, 0.0 }
 0x467   : > { %1185 = vadd.xlane.f32.xlu1 %v1184_v49  ;;  %v1893_v49 = vld [vmem:[%s793_s16] ss:$0 sm:$0xff] }
 0x478   : > { %1189 = vrot.lane.b32.xlu1 %v921_v24, %s2364_s18 }
 0x479   : > { %1022 = vrot.lane.b32.xlu0 %v921_v24, %s2365_s3  ;;  %v1889_v24 = vld [vmem:[%s2966_s1] ss:$0 sm:$0xff]  ;;  %s2975_s1 = sld [smem:[#allocation42_spill]] }
 0x47f   : > { %s2828_s0 = scalar_lea.hbm %s2975_s1, %s1898_s13 }
 0x4ec   : > { %v1019_v50 = vpop.xlane.xlu0 %1018 }
 0x4ed   : > { %2127 = vrcp.f32 %v1019_v50 }
 0x4f0   : > { %v1023_v51 = vpop.permute.xlu0 %1022  ;;  %v1186_v52 = vpop.xlane.xlu1 %1185 }
 0x4f1   : > { %2129 = vrcp.f32 %v1186_v52  ;;  %1954 = vmatpush3.msra.mxu1 %v1023_v51 }
 0x4f2   : > { %1963 = vmatprep.subr.mxu1 %v2359_v17 }
 0x4f4   : > { %v1190_v55 = vpop.permute.xlu1 %1189 }
 0x4fa   : > { %v2128_v53 = vpop.eup %2127 }
 0x4fb   : > { %v1021_v54 = vmul.f32 %v2128_v53, %v2124_v46 }
 0x4fd   : > { %1956 = vmatmul.mubr.msk.f32.vlgmr.msra.gmra.mxu1 %vm1010_vm4, %v1021_v54 }
 0x4fe   : > { %v2130_v56 = vpop.eup %2129  ;;  %1964 = vmatpush3.msra.mxu1 %v1190_v55  ;;  %1965 = vmatprep.mubr.msk.f32.mxu1 %vm2360_vm1, %v2359_v17 }
 0x4ff   : > { %v1188_v57 = vmul.f32 %v2130_v56, %v2126_v48  ;;  %1979 = vmatprep.subr.mxu1 %v2359_v17 }
 0x501   : > { %1966 = vmatmul.mubr.msk.f32.vlgmr.msra.gmra.mxu1 %vm1010_vm4, %v1188_v57 }
 0x502   : > { %1987 = vmatprep.mubr.msk.f32.mxu1 %vm2360_vm1, %v2359_v17  ;;  %1980 = vmatpush3.msra.mxu1 %v1388_v15 }
 0x503   : > { %1981 = vmatprep.subr.mxu1 %v2359_v17 }
 0x504   : > { %1982 = vmatpush3.msra.mxu1 %v1387_v16 }
 0x505   : > { %1983 = vmatprep.subr.mxu1 %v2359_v17 }
 0x506   : > { %1984 = vmatpush3.msra.mxu1 %v1386_v18 }
 0x507   : > { %1985 = vmatprep.subr.mxu1 %v2359_v17 }
 0x508   : > { %1986 = vmatpush3.msra.mxu1 %v1385_v19 }
 0x5bd   : > { %v1094_v62 = vpop.f32.mrf.mxu1 }
 0x5bf   : > { %v1957_v63 = vpop.f32.mrf.mxu1 }
 0x5c1   : > { %v1261_v0 = vpop.f32.mrf.mxu1 }
 0x5c2   : > { %1266 = vrot.lane.b32.xlu1 %v1261_v0, %s2366_s10  ;;  %v1895_v0 = vld [vmem:[%s796_s30] ss:$0 sm:$0xff]  ;;  %s1600_s30 = scalar_lea.sflag [#allocation5], %s2606_s12 }
 0x5c3   : > { %v1967_v1 = vpop.f32.mrf.mxu1 }
 0x634   : > { %v1267_v2 = vpop.permute.xlu1 %1266 }
 0x635   : > { %v1269_v3 = vsel %vm927_vm3, %v1094_v62, %v1267_v2  ;;  %v1896_v2 = vld [vmem:[%s799_s9] ss:$0 sm:$0xff]  ;;  %s2367_s9 = smov [#allocation11]  }
 0x636   : > { %1977 = vmatmul.mubr.msk.f32.vlgmr.msra.gmra.mxu0 %vm850_vm2, %v1269_v3  ;;  %s2249_s14 = sshll.u32 %s2367_s9, 4  ;;  %s2250_s14 = int_to_ptr.vmem [resolvable:$false] %s2249_s14 }
 0x637   : > { %2006 = vmatprep.mubr.msk.f32.mxu0 %vm2360_vm1, %v2359_v17  ;;  %1991 = vmatpush3.msra.mxu0 %v1485_v29  ;;  %s2251_s17 = scalar_lea.vmem %s2250_s14, 256  ;;  %p2252_p3 = scmp.lt.s32.totalorder %s1614_s20, %s2250_s14 }
 0x638   : > { %1992 = vmatprep.subr.mxu0 %v2359_v17  ;;  %p2253_p1 = scmp.lt.s32.totalorder %s2251_s17, %s2245_s4 }
 0x639   : > { %1993 = vmatpush3.msra.mxu0 %v1484_v30 }
 0x63a   : > { %1994 = vmatprep.subr.mxu0 %v2359_v17  ;;  %p2254_p2 = por %p2253_p1, %p2252_p3 }
 0x63b   : > { %1995 = vmatpush3.msra.mxu0 %v1483_v31 }
 0x63c   : > { %1996 = vmatprep.subr.mxu0 %v2359_v17  ;;  %p2255_p12 = pnand %p2254_p2, %p2248_p13 }
 0x63d   : > { %1997 = vmatpush3.msra.mxu0 %v1482_v32 }
 0x63e   : > { %1998 = vmatprep.subr.mxu0 %v2359_v17 }
 0x63f   : > { %1999 = vmatpush3.msra.mxu0 %v1481_v33 }
 0x640   : > { %2000 = vmatprep.subr.mxu0 %v2359_v17 }
 0x641   : > { %2001 = vmatpush3.msra.mxu0 %v1480_v34 }
 0x642   : > { %2002 = vmatprep.subr.mxu0 %v2359_v17 }
 0x643   : > { %2003 = vmatpush3.msra.mxu0 %v1479_v35 }
 0x644   : > { %2004 = vmatprep.subr.mxu0 %v2359_v17 }
 0x645   : > { %2005 = vmatpush3.msra.mxu0 %v1478_v36 }
 0x6f6   : > { %v1350_v5 = vpop.f32.mrf.mxu0 }
 0x6f7   : > { %v1351_v6 = vadd.f32 %v1887_v4, %v1350_v5 }
 0x6f8   : > { %v1978_v7 = vpop.f32.mrf.mxu0 }
 0x6f9   : > { %v1354_v8 = vadd.f32 %v1351_v6, %v2711_v21 }
 0x6fb   : > { %v1357_v9 = vsel %vm850_vm2, %v1354_v8, 0.0 }
 0x6fc   : > { %1358 = vadd.xlane.f32.xlu0 %v1357_v9 }
 0x785   : > { %v1359_v10 = vpop.xlane.xlu0 %1358 }
 0x786   : > { %v1361_v11 = vmul.f32 0.03125, %v1359_v10 }
 0x788   : > { %v1362_v12 = vsub.f32 %v1354_v8, %v1361_v11 }
 0x78a   : > { %v1363_v13 = vmul.f32 %v1362_v12, %v1362_v12 }
 0x78c   : > { %v1364_v14 = vsel %vm850_vm2, %v1363_v13, 0.0 }
 0x78d   : > { %1365 = vadd.xlane.f32.xlu1 %v1364_v14 }
 0x816   : > { %v1366_v20 = vpop.xlane.xlu1 %1365 }
 0x817   : > { %v1367_v21 = vmul.f32 0.03125, %v1366_v20 }
 0x819   : > { %v1368_v22 = vadd.f32 1e-12, %v1367_v21 }
 0x81b   : > { %2131 = vrsqrt.f32 %v1368_v22 }
 0x828   : > { %v2132_v23 = vpop.eup %2131 }
 0x829   : > { %v1370_v25 = vmul.f32 %v2132_v23, %v1362_v12 }
 0x82b   : > { %v1377_v27 = vmul.f32 %v1889_v24, %v1370_v25 }
 0x82d   : > { %v1384_v28 = vadd.f32 %v1890_v26, %v1377_v27 }
 0x82f   : > { %1988 = vmatmul.mubr.msk.f32.vlgmr.msra.gmra.mxu1 %vm850_vm2, %v1384_v28 }
 0x8ef   : > { %v1465_v38 = vpop.f32.mrf.mxu1 }
 0x8f0   : > { %v1466_v39 = vadd.f32 %v1891_v37, %v1465_v38 }
 0x8f1   : > { %v1989_v40 = vpop.f32.mrf.mxu1 }
 0x8f2   : > { %v1469_v41 = vmul.f32 %v1466_v39, %v1466_v39 }
 0x8f4   : > { %v1470_v42 = vmul.f32 %v1469_v41, %v1466_v39 }
 0x8f6   : > { %v1471_v43 = vmul.f32 0.044715, %v1470_v42 }
 0x8f8   : > { %v1472_v44 = vadd.f32 %v1471_v43, %v1466_v39 }
 0x8fa   : > { %v1473_v45 = vmul.f32 0.7978846, %v1472_v44 }
 0x8fc   : > { %2133 = vtanh.f32 %v1473_v45 }
 0x909   : > { %v2134_v46 = vpop.eup %2133 }
 0x90a   : > { %v1475_v47 = vadd.f32 1.0, %v2134_v46 }
 0x90c   : > { %v1476_v48 = vmul.f32 0.5, %v1475_v47 }
 0x90e   : > { %v1477_v17 = vmul.f32 %v1476_v48, %v1466_v39 }
 0x910   : > { %2007 = vmatmul.mubr.msk.f32.vlgmr.msra.gmra.mxu0 %vm1493_vm5, %v1477_v17 }
 0x9d0   : > { %v1563_v50 = vpop.f32.mrf.mxu0 }
 0x9d1   : > { %v1564_v51 = vadd.f32 %v1893_v49, %v1563_v50 }
 0x9d2   : > { %v2008_v52 = vpop.f32.mrf.mxu0 }
 0x9d3   : > { %v1567_v53 = vadd.f32 %v1564_v51, %v1384_v28 }
 0x9d5   : > { %v1570_v54 = vsel %vm850_vm2, %v1567_v53, 0.0 }
 0x9d6   : > { %1571 = vadd.xlane.f32.xlu0 %v1570_v54 }
 0xa5f   : > { %v1572_v55 = vpop.xlane.xlu0 %1571 }
 0xa60   : > { %v1573_v56 = vmul.f32 0.03125, %v1572_v55 }
 0xa62   : > { %v1574_v57 = vsub.f32 %v1567_v53, %v1573_v56 }
 0xa64   : > { %v1575_v58 = vmul.f32 %v1574_v57, %v1574_v57 }
 0xa66   : > { %v1576_v59 = vsel %vm850_vm2, %v1575_v58, 0.0 }
 0xa67   : > { %1577 = vadd.xlane.f32.xlu0 %v1576_v59 }
 0xaf0   : > { %v1578_v60 = vpop.xlane.xlu0 %1577 }
 0xaf1   : > { %v1579_v61 = vmul.f32 0.03125, %v1578_v60 }
 0xaf3   : > { %v1580_v62 = vadd.f32 1e-12, %v1579_v61 }
 0xaf5   : > { %2135 = vrsqrt.f32 %v1580_v62 }
 0xb02   : > { %v2136_v63 = vpop.eup %2135 }
 0xb03   : > { %v1582_v1 = vmul.f32 %v2136_v63, %v1574_v57 }
 0xb05   : > { %v1589_v3 = vmul.f32 %v1895_v0, %v1582_v1 }
 0xb07   : > { %v1596_v4 = vadd.f32 %v1896_v2, %v1589_v3 }
 0xb09   : > { %1597 = vst.msk [vmem:[#allocation2] sm:$0xff] %vm850_vm2, %v1596_v4  ;;  %1598 = vst.msk [vmem:[%s2692_s6] sm:$0xff] %vm850_vm2, %v1596_v4 }
 0xb0a   : > { %2258 = shalt.err (!%p2255_p12)
}
 0xb0b   : > { %s2259_s6 = scalar_lea.hbm %s2828_s0, 128  ;;  %s2263_s23 = scalar_lea.hbm %s2975_s1, 256 }
 0xb0c   : > { %p2260_p8 = scmp.ne.s32.totalorder %s2828_s0, %s2259_s6  ;;  %p2264_p6 = scmp.lt.s32.totalorder %s2828_s0, %s2975_s1 }
 0xb0d   : > { %p2265_p11 = scmp.lt.s32.totalorder %s2263_s23, %s2259_s6 }
 0xb0e   : > { %p2261_p9 = pnand %p2260_p8, %p2558_p0 }
 0xb0f   : > { %p2266_p10 = por %p2265_p11, %p2264_p6 }
 0xb10   : > { %p2262_p4 = pneg %p2261_p9 }
 0xb12   : > { %p2267_p5 = pnand %p2266_p10, %p2262_p4 }
 0xb14   : > { %2270 = shalt.err (!%p2267_p5)
}
 0xb15   : > { %2021 = dma.vmem_to_hbm [thread:$0]  (%p2558_p0), %s1614_s20, 128, %s2828_s0, %s1600_s30  }
 0xb16 PF: > { %s2976_s22 = sld [smem:[#allocation23_spill]] }
 0xb17   : > { %s2977_s26 = sld [smem:[#allocation17_spill]] }
 0xb18   : > { %s2978_s11 = sld [smem:[#allocation24_spill]] }
 0xb1c   : > { %p2046_p7 = scmp.ge.s32.totalorder %s2976_s22, 2 }
 0xb1d   : > { %s1625_s27 = sand.u32 1, %s2977_s26  }
 0xb1e   : > { %p2979_p13 = scmp.ne.s32.totalorder %s2978_s11, 0  ;;  %s1626_s25 = scalar_lea.sflag [#allocation5], %s1625_s27 }
 0xb20   : > { %p2038_p3 = pnand %p2046_p7, %p2979_p13 }
 0xb22   : > { %p2039_p1 = pneg %p2038_p3 }
 0xb24   : > { %2320 = dma.done.wait (%p2039_p1), %s1626_s25, 128  }
 0xb25   : > { %2322 = vsyncadd (%p2039_p1), %s1626_s25, 4294967168  ;;  %s36_s28 = sadd.s32 1, %s2976_s22   ;;  %s2980_s21 = sld [smem:[#allocation18_spill]] }
 0xb26   : > { %p33_p2 = scmp.ge.s32.totalorder %s36_s28, 6   ;;  %s2981_s22 = sld [smem:[#allocation19_spill]] }
 0xb27   : > { %s2982_s23 = sld [smem:[#allocation28_spill]] }
 0xb28   : > { %s2983_s24 = sld [smem:[#allocation21_spill]]  ;;  %35 = sbr.rel (!%p33_p2) target bundleno = 25 (0x19), region = 190 }
 0xb29   : > { %s2984_s25 = sld [smem:[#allocation22_spill]] }
 0xb2a   : > { %s2985_s26 = sld [smem:[#allocation25_spill]] }
 0xb2b   : > { %s2986_s27 = sld [smem:[#allocation27_spill]] }
 0xb2d   :  { %1631 = vsyncpa [#allocation4], 1 }
 0xb2e   :  { %1633 = vsyncpa [#allocation4 + $0x1], 1 }
 0xb2f   :  { %1634 = vsyncpa [#allocation7], 1 }
 0xb30   :  { %1636 = vsyncpa [#allocation7 + $0x1], 1 }
 0xb31   :  { %1637 = vsyncpa [#allocation10], 1 }
 0xb32   :  { %1638 = vsyncpa [#allocation5], 1 }
 0xb33   :  { %1640 = vsyncpa [#allocation5 + $0x1], 1 }

</bundles_post_ra>
